<compile_context>
chip_gen: v7x
topology: tpu7x:2x2x1
jax: 0.10.0
libtpu: 0.0.40
codegen_flags: <defaults>
</compile_context>

<pallas_src>
import jax
import jax.numpy as jnp
from jax.experimental import pallas as pl
from jax.experimental.pallas import tpu as pltpu


FEATURES = 26


def _round_up(x, m):
    return ((x + m - 1) // m) * m


def _make_fcdnn_kernel(n_layers):
    """Fused kernel: n_layers x (Linear + ReLU) followed by per-sample softmax.

    Operates feature-major: x_ref is (F, TB) with the batch on lanes.
    """

    def kernel(*refs):
        # refs = (x_ref, w0_ref, b0_ref, ..., w{L-1}_ref, b{L-1}_ref, out_ref)
        x_ref = refs[0]
        out_ref = refs[-1]
        param_refs = refs[1:-1]

        h = x_ref[...]                                 # bf16 (F, TB)
        for i in range(n_layers):
            w = param_refs[2 * i][...]                 # bf16 (out_i, in_i), VMEM-resident
            b = param_refs[2 * i + 1][...]             # f32  (out_i, 1)
            y = jnp.dot(w, h, preferred_element_type=jnp.float32) + b  # f32 (out_i, TB)
            y = jnp.maximum(y, 0.0)                    # ReLU after every Linear
            # Feed the next matmul in bf16; keep the final activations in f32.
            h = y.astype(jnp.bfloat16) if i + 1 < n_layers else y

        # Softmax over the class axis (axis 0) of each sample-column (== Softmax(0)
        # on each original 1-D input).  EXACT reciprocal: rows must sum to 1.
        m = jnp.max(h, axis=0, keepdims=True)
        e = jnp.exp(h - m)
        s = jnp.sum(e, axis=0, keepdims=True)
        out_ref[...] = e * pl.reciprocal(s, approx=False)

    return kernel


def _choose_batch_tile(B, batch_tile):
    """Lane-aligned batch tile; large enough to amortize per-step overhead, small
    enough that the v7x 2-TC 'parallel' axis gets >= 4 grid steps when B allows."""
    tb = min(batch_tile, _round_up(max(B, 1), 128))
    tb = max(128, _round_up(tb, 128))
    if B >= 4 * 128:
        # keep >= 4 grid steps so megacore sharding + pipelining have work
        tb = min(tb, max(128, _round_up(-(-B // 4), 128)))
    return tb


def fcdnn_forward(x_t, params, *, batch_tile=8192, vmem_limit_bytes=None):
    """Batched FCDNN forward, feature-major in / class-major out.

    x_t:    (F, B) bfloat16 feature-major input; column b == one PyTorch forward()
            call.  (Produce this layout/dtype upstream -- the wrapper does no
            transpose/cast so the kernel's own HBM traffic is the only traffic.)
    params: list of (W_i, b_i) with W_i (out_i, in_i) bfloat16 (PyTorch weight
            layout) and b_i (out_i, 1) float32.
    Returns (out_dim, B) float32 softmax probabilities (class-major).
    """
    if x_t.dtype != jnp.bfloat16:
        x_t = x_t.astype(jnp.bfloat16)  # no-op when the producer already emits bf16

    F, B = x_t.shape
    n_layers = len(params)
    out_dim = params[-1][0].shape[0]
    assert params[0][0].shape[1] == F, "first layer in_features must match x rows"

    tb = _choose_batch_tile(B, batch_tile)
    b_pad = _round_up(max(B, 1), tb)

    # Only pad the batch axis, and only when needed (padded columns are math-neutral
    # per-column and sliced off below).  For best perf feed B as a multiple of tb.
    if b_pad != B:
        x_t = jnp.pad(x_t, ((0, 0), (0, b_pad - B)))

    flat_args = [x_t]
    for w, b in params:
        flat_args.extend([w, b])

    grid = (b_pad // tb,)

    # x is streamed per batch tile (feature axis = full extent, no padding needed);
    # the tiny weights/biases use constant index_maps -> same VMEM block every step.
    in_specs = [pl.BlockSpec((F, tb), lambda i: (0, i))]
    for w, b in params:
        in_specs.append(pl.BlockSpec(w.shape, lambda i: (0, 0)))
        in_specs.append(pl.BlockSpec(b.shape, lambda i: (0, 0)))
    out_specs = pl.BlockSpec((out_dim, tb), lambda i: (0, i))

    out_t = pl.pallas_call(
        _make_fcdnn_kernel(n_layers),
        out_shape=jax.ShapeDtypeStruct((out_dim, b_pad), jnp.float32),
        grid=grid,
        in_specs=in_specs,
        out_specs=out_specs,
        compiler_params=pltpu.CompilerParams(
            dimension_semantics=("parallel",),  # batch tiles independent (v7x: 2 TCs)
            vmem_limit_bytes=vmem_limit_bytes,
        ),
    )(*flat_args)

    # Class-major result; drop batch padding only if any was added.
    return out_t if b_pad == B else out_t[:, :B]


def init_params(key, nodes):
    """Parameter init mirroring nn.Linear: W (out, in), b (out,), U(-k, k), k=1/sqrt(in).

    Weights are stored in bfloat16 (MXU input dtype); biases in float32 as (out, 1).
    """
    params = []
    for i in range(len(nodes) - 1):
        fan_in, fan_out = nodes[i], nodes[i + 1]
        key, kw, kb = jax.random.split(key, 3)
        bound = 1.0 / (fan_in ** 0.5)
        w = jax.random.uniform(kw, (fan_out, fan_in), jnp.float32, -bound, bound)
        b = jax.random.uniform(kb, (fan_out, 1), jnp.float32, -bound, bound)
        params.append((w.astype(jnp.bfloat16), b))
    return params


def fcdnn_reference(x, params):
    """Pure-JAX reference (row-major x: (B, F)) with matching bf16 matmul-input
    quantization."""
    n = len(params)
    h = x.astype(jnp.bfloat16).astype(jnp.float32)
    for i, (w, b) in enumerate(params):
        y = h @ w.astype(jnp.float32).T + b[:, 0]
        y = jnp.maximum(y, 0.0)
        h = y.astype(jnp.bfloat16).astype(jnp.float32) if i + 1 < n else y
    return jax.nn.softmax(h, axis=-1)


if __name__ == "__main__":
    # FCDNN(nodes=[26, 32, 32, 2], activation='ReLU') — Titanic classifier.
    nodes = [FEATURES, 32, 32, 2]
    batch = 8  # batch of independent per-sample forward() calls

    key = jax.random.PRNGKey(0)
    key, kx = jax.random.split(key)
    x = jax.random.uniform(kx, (batch, FEATURES), jnp.float32)  # row-major, for the reference
    params = init_params(key, nodes)

    # Feature-major bf16 input, as the upstream feature pipeline would produce it.
    x_t = jnp.asarray(x.T, jnp.bfloat16)                        # (F, B)

    out = fcdnn_forward(x_t, params)                             # (out_dim, B), class-major
    out = jax.block_until_ready(out)

    ref = fcdnn_reference(x, params)                             # (B, out_dim)
    assert out.shape == (nodes[-1], batch)
    # Tolerance covers bf16 matmul inputs (matched in the reference).
    assert jnp.allclose(out.T, ref, atol=2e-3, rtol=2e-3), "Pallas output mismatch vs JAX reference"
    # Each sample's probabilities must sum to ~1 (exact-reciprocal softmax).
    assert jnp.allclose(jnp.sum(out, axis=0), jnp.ones((batch,)), atol=1e-5)

    print("KERNEL_OK")
</pallas_src>

<mosaic_0001>
module attributes {stable_mosaic.version = 11 : i64} {
  func.func @kernel(%arg0: i32, %arg1: memref<26x128xbf16, #tpu.memory_space<vmem>>, %arg2: memref<32x26xbf16, #tpu.memory_space<vmem>>, %arg3: memref<32x1xf32, #tpu.memory_space<vmem>>, %arg4: memref<32x32xbf16, #tpu.memory_space<vmem>>, %arg5: memref<32x1xf32, #tpu.memory_space<vmem>>, %arg6: memref<2x32xbf16, #tpu.memory_space<vmem>>, %arg7: memref<2x1xf32, #tpu.memory_space<vmem>>, %arg8: memref<2x128xf32, #tpu.memory_space<vmem>>) attributes {dimension_semantics = [#tpu.dimension_semantics<parallel>], iteration_bounds = array<i64: 1>, scalar_prefetch = 0 : i64, scratch_operands = 0 : i64, tpu.core_type = #tpu.core_type<tc>, window_params = [{transform_indices = @transform_0, window_bounds = array<i64: 26, 128>}, {pipeline_mode = #tpu.pipeline_mode<synchronous>, transform_indices = @transform_1, window_bounds = array<i64: 32, 26>}, {pipeline_mode = #tpu.pipeline_mode<synchronous>, transform_indices = @transform_2, window_bounds = array<i64: 32, 1>}, {pipeline_mode = #tpu.pipeline_mode<synchronous>, transform_indices = @transform_3, window_bounds = array<i64: 32, 32>}, {pipeline_mode = #tpu.pipeline_mode<synchronous>, transform_indices = @transform_4, window_bounds = array<i64: 32, 1>}, {pipeline_mode = #tpu.pipeline_mode<synchronous>, transform_indices = @transform_5, window_bounds = array<i64: 2, 32>}, {pipeline_mode = #tpu.pipeline_mode<synchronous>, transform_indices = @transform_6, window_bounds = array<i64: 2, 1>}, {transform_indices = @transform_7, window_bounds = array<i64: 2, 128>}]} {
    %c0 = arith.constant 0 : index
    %c0_0 = arith.constant 0 : index
    %0 = vector.load %arg1[%c0, %c0_0] : memref<26x128xbf16, #tpu.memory_space<vmem>>, vector<26x128xbf16>
    %c0_1 = arith.constant 0 : index
    %c0_2 = arith.constant 0 : index
    %1 = vector.load %arg2[%c0_1, %c0_2] : memref<32x26xbf16, #tpu.memory_space<vmem>>, vector<32x26xbf16>
    %c0_3 = arith.constant 0 : index
    %c0_4 = arith.constant 0 : index
    %2 = vector.load %arg3[%c0_3, %c0_4] : memref<32x1xf32, #tpu.memory_space<vmem>>, vector<32x1xf32>
    %cst = arith.constant dense<0.000000e+00> : vector<32x128xf32>
    %3 = tpu.matmul %1, %0, %cst {dimension_numbers = #tpu.dot_dimension_numbers<[1], [0], [0], [1], [0, 0, 1, 1], [], []>} : vector<32x26xbf16>, vector<26x128xbf16>, vector<32x128xf32> -> vector<32x128xf32>
    %4 = vector.broadcast %2 : vector<32x1xf32> to vector<32x128xf32>
    %5 = arith.addf %3, %4 : vector<32x128xf32>
    %cst_5 = arith.constant 0.000000e+00 : f32
    %6 = vector.broadcast %cst_5 : f32 to vector<32x128xf32>
    %7 = arith.maximumf %5, %6 : vector<32x128xf32>
    %8 = arith.truncf %7 : vector<32x128xf32> to vector<32x128xbf16>
    %c0_6 = arith.constant 0 : index
    %c0_7 = arith.constant 0 : index
    %9 = vector.load %arg4[%c0_6, %c0_7] : memref<32x32xbf16, #tpu.memory_space<vmem>>, vector<32x32xbf16>
    %c0_8 = arith.constant 0 : index
    %c0_9 = arith.constant 0 : index
    %10 = vector.load %arg5[%c0_8, %c0_9] : memref<32x1xf32, #tpu.memory_space<vmem>>, vector<32x1xf32>
    %cst_10 = arith.constant dense<0.000000e+00> : vector<32x128xf32>
    %11 = tpu.matmul %9, %8, %cst_10 {dimension_numbers = #tpu.dot_dimension_numbers<[1], [0], [0], [1], [0, 0, 1, 1], [], []>} : vector<32x32xbf16>, vector<32x128xbf16>, vector<32x128xf32> -> vector<32x128xf32>
    %12 = vector.broadcast %10 : vector<32x1xf32> to vector<32x128xf32>
    %13 = arith.addf %11, %12 : vector<32x128xf32>
    %cst_11 = arith.constant 0.000000e+00 : f32
    %14 = vector.broadcast %cst_11 : f32 to vector<32x128xf32>
    %15 = arith.maximumf %13, %14 : vector<32x128xf32>
    %16 = arith.truncf %15 : vector<32x128xf32> to vector<32x128xbf16>
    %c0_12 = arith.constant 0 : index
    %c0_13 = arith.constant 0 : index
    %17 = vector.load %arg6[%c0_12, %c0_13] : memref<2x32xbf16, #tpu.memory_space<vmem>>, vector<2x32xbf16>
    %c0_14 = arith.constant 0 : index
    %c0_15 = arith.constant 0 : index
    %18 = vector.load %arg7[%c0_14, %c0_15] : memref<2x1xf32, #tpu.memory_space<vmem>>, vector<2x1xf32>
    %cst_16 = arith.constant dense<0.000000e+00> : vector<2x128xf32>
    %19 = tpu.matmul %17, %16, %cst_16 {dimension_numbers = #tpu.dot_dimension_numbers<[1], [0], [0], [1], [0, 0, 1, 1], [], []>} : vector<2x32xbf16>, vector<32x128xbf16>, vector<2x128xf32> -> vector<2x128xf32>
    %20 = vector.broadcast %18 : vector<2x1xf32> to vector<2x128xf32>
    %21 = arith.addf %19, %20 : vector<2x128xf32>
    %cst_17 = arith.constant 0.000000e+00 : f32
    %22 = vector.broadcast %cst_17 : f32 to vector<2x128xf32>
    %23 = arith.maximumf %21, %22 : vector<2x128xf32>
    %cst_18 = arith.constant dense<0xFF800000> : vector<128xf32>
    %24 = vector.multi_reduction <maximumf>, %23, %cst_18 [0] : vector<2x128xf32> to vector<128xf32>
    %25 = vector.shape_cast %24 : vector<128xf32> to vector<1x128xf32>
    %26 = vector.broadcast %25 : vector<1x128xf32> to vector<2x128xf32>
    %27 = arith.subf %23, %26 : vector<2x128xf32>
    %28 = math.exp %27 : vector<2x128xf32>
    %cst_19 = arith.constant dense<0.000000e+00> : vector<128xf32>
    %29 = vector.multi_reduction <add>, %28, %cst_19 [0] : vector<2x128xf32> to vector<128xf32>
    %30 = vector.shape_cast %29 : vector<128xf32> to vector<1x128xf32>
    %31 = tpu.reciprocal %30 : vector<1x128xf32> -> vector<1x128xf32>
    %32 = vector.broadcast %31 : vector<1x128xf32> to vector<2x128xf32>
    %33 = arith.mulf %28, %32 : vector<2x128xf32>
    %c0_20 = arith.constant 0 : index
    %c0_21 = arith.constant 0 : index
    %34 = vector.load %arg8[%c0_20, %c0_21] : memref<2x128xf32, #tpu.memory_space<vmem>>, vector<2x128xf32>
    tpu.vector_store %arg8[%c0_20, %c0_21], %33 {strides = array<i32>} : memref<2x128xf32, #tpu.memory_space<vmem>>, vector<2x128xf32>,
    return
  }
  func.func @transform_0(%arg0: i32) -> (i32, i32) {
    %c0_i32 = arith.constant 0 : i32
    %c0_i32_0 = arith.constant 0 : i32
    return %c0_i32, %arg0 : i32, i32
  }
  func.func @transform_1(%arg0: i32) -> (i32, i32) {
    %c0_i32 = arith.constant 0 : i32
    %c0_i32_0 = arith.constant 0 : i32
    %c0_i32_1 = arith.constant 0 : i32
    return %c0_i32, %c0_i32_0 : i32, i32
  }
  func.func @transform_2(%arg0: i32) -> (i32, i32) {
    %c0_i32 = arith.constant 0 : i32
    %c0_i32_0 = arith.constant 0 : i32
    %c0_i32_1 = arith.constant 0 : i32
    return %c0_i32, %c0_i32_0 : i32, i32
  }
  func.func @transform_3(%arg0: i32) -> (i32, i32) {
    %c0_i32 = arith.constant 0 : i32
    %c0_i32_0 = arith.constant 0 : i32
    %c0_i32_1 = arith.constant 0 : i32
    return %c0_i32, %c0_i32_0 : i32, i32
  }
  func.func @transform_4(%arg0: i32) -> (i32, i32) {
    %c0_i32 = arith.constant 0 : i32
    %c0_i32_0 = arith.constant 0 : i32
    %c0_i32_1 = arith.constant 0 : i32
    return %c0_i32, %c0_i32_0 : i32, i32
  }
  func.func @transform_5(%arg0: i32) -> (i32, i32) {
    %c0_i32 = arith.constant 0 : i32
    %c0_i32_0 = arith.constant 0 : i32
    %c0_i32_1 = arith.constant 0 : i32
    return %c0_i32, %c0_i32_0 : i32, i32
  }
  func.func @transform_6(%arg0: i32) -> (i32, i32) {
    %c0_i32 = arith.constant 0 : i32
    %c0_i32_0 = arith.constant 0 : i32
    %c0_i32_1 = arith.constant 0 : i32
    return %c0_i32, %c0_i32_0 : i32, i32
  }
  func.func @transform_7(%arg0: i32) -> (i32, i32) {
    %c0_i32 = arith.constant 0 : i32
    %c0_i32_0 = arith.constant 0 : i32
    return %c0_i32, %arg0 : i32, i32
  }
}

</mosaic_0001>

<bundles_post_ra>
// kernel: tpu_custom_call.1
= control target key start
LH: loop header
LB: loop body
LE: loop exit
PB: predicated region body
PF: predicated region fallthrough
CT: control target
= control target key end

     0   :  { %vm88_vm0 = vcmask 1044480   ;;  %vm81_vm1 = vcmask 211968   ;;  %v420_v6 = vmov 0   ;;  %s529_s0 = inlined_call_operand.vmem [shape: bf16[26,128], index: 0, kind: input, shape index: {}]   ;;  %s530_s1 = inlined_call_operand.vmem [shape: bf16[32,26], index: 1, kind: input, shape index: {}]   ;;  %s531_s2 = inlined_call_operand.vmem [shape: f32[32,1], index: 2, kind: input, shape index: {}]   ;;  %s532_s3 = inlined_call_operand.vmem [shape: bf16[32,32], index: 3, kind: input, shape index: {}]   ;;  %s533_s4 = inlined_call_operand.vmem [shape: f32[32,1], index: 4, kind: input, shape index: {}]   ;;  %s534_s5 = inlined_call_operand.vmem [shape: bf16[2,32], index: 5, kind: input, shape index: {}]   ;;  %s535_s6 = inlined_call_operand.vmem [shape: f32[2,1], index: 6, kind: input, shape index: {}]   ;;  %s536_s7 = inlined_call_operand.hbm [shape: f32[2,128], index: 7, kind: output, shape index: {}]  }
   0x1   :  { %v386_v0 = vld [vmem:[%s529_s0] sm:$0xff]   ;;  %v387_v1 = vld [vmem:[%s529_s0 + $0x8] sm:$0x1f]   ;;  %v38_v5 = vld [vmem:[%s531_s2 + $0x10] sm:$0xff]  ;;  %384 = vset.pattern.permute.xlu0 %v420_v6  ;;  %385 = vset.pattern.permute.xlu1 %v420_v6 }
   0x2   :  { %355 = vmatprep.subr.bf16.mxu0 %v386_v0  ;;  %v388_v2 = vld [vmem:[%s530_s1] sm:$0xff]   ;;  %v90_v3 = vsel %vm88_vm0, %v387_v1, 0  ;;  %v389_v7 = vld [vmem:[%s530_s1 + $0x8] sm:$0xff]   ;;  %52 = vperm.xlu1 %385, %v38_v5   ;;  %v39_v9 = vld [vmem:[%s531_s2 + $0x18] sm:$0xff] }
   0x3   :  { %356 = vmatpush3.bf16.msra.mxu0 %v386_v0  ;;  %359 = vmatprep.mubr.msk.bf16.mxu0 %vm81_vm1, %v388_v2  ;;  %v36_v4 = vld [vmem:[%s531_s2] sm:$0xff]  ;;  %v37_v8 = vld [vmem:[%s531_s2 + $0x8] sm:$0xff] }
   0x4   :  { %379 = vmatprep.subr.msk.bf16.mxu0 %vm88_vm0, %v387_v1  ;;  %42 = vperm.xlu0 %384, %v36_v4  }
   0x7   :  { %358 = vmatpush3.bf16.msra.mxu0 %v90_v3 }
   0x8   :  { %12 = vsyncpa [#allocation3], 0  ;;  %47 = vperm.xlu0 %384, %v37_v8   ;;  %v151_v10 = vld [vmem:[%s533_s4] sm:$0xff]  ;;  %57 = vperm.xlu1 %385, %v39_v9   ;;  %v152_v11 = vld [vmem:[%s533_s4 + $0x8] sm:$0xff]  ;;  %vm185_vm2 = vcmask 261120   ;;  %v421_v35 = vmov 0.0  }
   0x9   :  { %v153_v12 = vld [vmem:[%s533_s4 + $0x10] sm:$0xff]  ;;  %v154_v13 = vld [vmem:[%s533_s4 + $0x18] sm:$0xff]  ;;  %v248_v14 = vld [vmem:[%s535_s6] sm:$0x3]  ;;  %371 = vmatprep.subr.bf16.mxu0 %v421_v35  ;;  %vm422_vm3 = vmmov 0   ;;  %vm298_vm4 = vcmask 1041408  }
   0xa   :  { %360 = vmatmul.mubr.msk.bf16.vlgmr.msra.gmra.mrb[0].mxu0 %vm81_vm1, %v389_v7  ;;  %v390_v15 = vld [vmem:[%s532_s3] sm:$0xff]   ;;  %v391_v34 = vld [vmem:[%s532_s3 + $0x8] sm:$0xff]  }
   0xb   :  { %367 = vmatprep.mubr.msk.bf16.mxu1 %vm185_vm2, %v390_v15  ;;  %375 = vmatprep.mubr.msk.bf16.mxu0 %vm422_vm3, %v421_v35  ;;  %v247_v54 = vld [vmem:[%s534_s5] sm:$0x1]  ;;  %s423_s5 = smov [#allocation2]  }
   0xc   :  { %157 = vperm.xlu0 %384, %v151_v10   ;;  %162 = vperm.xlu1 %385, %v152_v11   ;;  %s325_s27 = sshll.u32 %s423_s5, 4  ;;  %s326_s27 = int_to_ptr.vmem [resolvable:$true] %s325_s27 }
   0xd   :  { %s396_s28 = scalar_lea.vmem %s326_s27, 32  ;;  %p401_p1 = scmp.lt.s32.totalorder %s326_s27, %s326_s27 }
   0xe   :  { %p397_p0 = scmp.ne.s32.totalorder %s326_s27, %s396_s28  ;;  %p402_p2 = scmp.lt.s32.totalorder %s396_s28, %s396_s28 }
  0x10   :  { %167 = vperm.xlu0 %384, %v153_v12   ;;  %172 = vperm.xlu1 %385, %v154_v13   ;;  %p403_p3 = por %p402_p2, %p401_p1 }
  0x12   :  { %p404_p4 = pnand %p403_p3, %p397_p0 }
  0x14   :  { %251 = vperm.xlu0 %384, %v248_v14  }
  0x81   :  { %v53_v16 = vpop.permute.xlu1 %52 }
  0x83   :  { %v43_v17 = vpop.permute.xlu0 %42 }
  0x87   :  { %v58_v21 = vpop.permute.xlu1 %57  ;;  %v48_v24 = vpop.permute.xlu0 %47 }
  0x8b   :  { %v158_v36 = vpop.permute.xlu0 %157  ;;  %v163_v37 = vpop.permute.xlu1 %162 }
  0x8f   :  { %v168_v38 = vpop.permute.xlu0 %167  ;;  %v173_v42 = vpop.permute.xlu1 %172 }
  0x93   :  { %v252_v55 = vpop.permute.xlu0 %251 }
  0xdd   :  { %v361_v18 = vpop.f32.mrb[0].mxu0 }
  0xde   :  { %v135_v19 = vadd.f32 %v361_v18, %v53_v16  ;;  %v126_v20 = vpop.f32.mrb[1].mxu0 }
  0xdf   :  { %v127_v22 = vadd.f32 %v126_v20, %v43_v17  ;;  %v362_v23 = vpop.f32.mrb[2].mxu0 }
  0xe0   :  { %v138_v25 = vadd.f32 %v362_v23, %v58_v21  ;;  %v129_v26 = vpop.f32.mrb[3].mxu0  ;;  %v143_v28 = vmax.f32 %v135_v19, 0.0 }
  0xe1   :  { %v130_v27 = vadd.f32 %v129_v26, %v48_v24  ;;  %v141_v30 = vmax.f32 %v127_v22, 0.0 }
  0xe2   :  { %v144_v29 = vmax.f32 %v138_v25, 0.0 }
  0xe3   :  { %v142_v31 = vmax.f32 %v130_v27, 0.0 }
  0xe4   :  { %v146_v32 = vpack.c.bf16 %v144_v29, %v143_v28 }
  0xe5   :  { %v145_v33 = vpack.c.bf16 %v142_v31, %v141_v30 }
  0xe7   :  { %363 = vmatprep.subr.bf16.mxu1 %v145_v33 }
  0xe8   :  { %364 = vmatpush3.bf16.msra.mxu1 %v145_v33 }
  0xe9   :  { %365 = vmatprep.subr.bf16.mxu1 %v146_v32 }
  0xec   :  { %366 = vmatpush3.bf16.msra.mxu1 %v146_v32 }
  0xef   :  { %368 = vmatmul.mubr.msk.bf16.vlgmr.msra.gmra.mrb[0].mxu1 %vm185_vm2, %v391_v34 }
 0x1c2   :  { %v369_v39 = vpop.f32.mrb[0].mxu1 }
 0x1c3   :  { %v235_v40 = vadd.f32 %v369_v39, %v168_v38  ;;  %v226_v41 = vpop.f32.mrb[1].mxu1 }
 0x1c4   :  { %v227_v43 = vadd.f32 %v226_v41, %v158_v36  ;;  %v370_v44 = vpop.f32.mrb[2].mxu1 }
 0x1c5   :  { %v238_v45 = vadd.f32 %v370_v44, %v173_v42  ;;  %v229_v46 = vpop.f32.mrb[3].mxu1  ;;  %v243_v48 = vmax.f32 %v235_v40, 0.0 }
 0x1c6   :  { %v230_v47 = vadd.f32 %v229_v46, %v163_v37  ;;  %v241_v50 = vmax.f32 %v227_v43, 0.0 }
 0x1c7   :  { %v244_v49 = vmax.f32 %v238_v45, 0.0 }
 0x1c8   :  { %v242_v51 = vmax.f32 %v230_v47, 0.0 }
 0x1c9   :  { %v246_v52 = vpack.c.bf16 %v244_v49, %v243_v48 }
 0x1ca   :  { %v245_v53 = vpack.c.bf16 %v242_v51, %v241_v50 }
 0x1cc   :  { %372 = vmatpush3.bf16.msra.mxu0 %v245_v53 }
 0x1cd   :  { %373 = vmatprep.subr.bf16.mxu0 %v421_v35 }
 0x1d0   :  { %374 = vmatpush3.bf16.msra.mxu0 %v246_v52 }
 0x1d3   :  { %376 = vmatmul.mubr.msk.bf16.vlgmr.msra.gmra.mrb[4].mxu0 %vm185_vm2, %v247_v54 }
 0x2a6   :  { %v291_v56 = vpop.f32.mrb[4].mxu0 }
 0x2a7   :  { %v292_v57 = vadd.f32 %v291_v56, %v252_v55  ;;  %v377_v58 = vpop.f32.mrb[5].mxu0 }
 0x2a8   :  { %v294_v59 = vpop.f32.mrb[6].mxu0 }
 0x2a9   :  { %v297_v60 = vmax.f32 %v292_v57, 0.0  ;;  %v378_v61 = vpop.f32.mrb[7].mxu0 }
 0x2ab   :  { %v299_v62 = vsel %vm298_vm4, %v297_v60, -inf }
 0x2ac   :  { %v300_v63 = vrot.slane %v299_v62, 4 }
 0x2ae   :  { %v301_v0 = vmax.f32 %v299_v62, %v300_v63 }
 0x2b0   :  { %v302_v1 = vrot.slane %v301_v0, 2 }
 0x2b2   :  { %v303_v2 = vmax.f32 %v301_v0, %v302_v1 }
 0x2b4   :  { %v304_v3 = vrot.slane %v303_v2, 1 }
 0x2b6   :  { %v305_v4 = vmax.f32 %v303_v2, %v304_v3 }
 0x2b8   :  { %v306_v5 = vsub.f32 %v297_v60, %v305_v4 }
 0x2ba   :  { %v307_v6 = vmul.f32 1.442695, %v306_v5 }
 0x2bc   :  { %392 = vpow2.f32 %v307_v6 }
 0x2c6   :  { %v393_v7 = vpop.eup %392 }
 0x2c7   :  { %v309_v8 = vsel %vm298_vm4, %v393_v7, 0.0 }
 0x2c8   :  { %v310_v9 = vrot.slane %v309_v8, 4 }
 0x2ca   :  { %v311_v10 = vadd.f32 %v310_v9, %v309_v8 }
 0x2cc   :  { %v312_v11 = vrot.slane %v311_v10, 2 }
 0x2ce   :  { %v313_v12 = vadd.f32 %v312_v11, %v311_v10 }
 0x2d0   :  { %v314_v13 = vrot.slane %v313_v12, 1 }
 0x2d2   :  { %v315_v14 = vadd.f32 %v314_v13, %v313_v12 }
 0x2d4   :  { %394 = vrcp.f32 %v315_v14 }
 0x2de   :  { %v395_v15 = vpop.eup %394 }
 0x2df   :  { %v317_v16 = vmul.f32 %v395_v15, %v393_v7 }
 0x2e1   :  { %318 = vst [vmem:[#allocation2] sm:$0x3] %v317_v16 }
 0x2e2   :  { %407 = shalt.err (!%p404_p4)
}
 0x2e3   :  { %s408_s8 = scalar_lea.hbm %s536_s7, 32 }
 0x2e4   :  { %p409_p5 = scmp.ne.s32.totalorder %s536_s7, %s408_s8  ;;  %p412_p6 = scmp.lt.u32.totalorder %s408_s8, %s536_s7 }
 0x2e6   :  { %p414_p7 = pnand %p412_p6, %p409_p5 }
 0x2e8   :  { %417 = shalt.err (!%p414_p7)
}
 0x2e9   :  { %328 = dma.vmem_to_hbm [thread:$0]  %s326_s27, 32, %s536_s7, [#allocation3]  }
 0x2ea   :  { %418 = dma.done.wait [#allocation3], 32  }
 0x2eb   :  { %419 = vsyncadd [#allocation3], 4294967264 }
 0x2ec   :  { %332 = vsyncpa [#allocation3], 1 }

</bundles_post_ra>
